<compile_context>
chip_gen: v7x
topology: tpu7x:2x2x1
jax: 0.10.0
libtpu: 0.0.40
codegen_flags: <defaults>
</compile_context>

<pallas_src>
import jax
import jax.numpy as jnp
from jax.experimental import pallas as pl
from jax.experimental.pallas import tpu as pltpu


def _pos_embed_kernel(coord_ref, x_ref, o_ref):
    # coord_ref: (2, THW)   x_ref: (1, C, THW)   o_ref: (1, C+2, THW)
    # Two wide, lane-dense block copies (coords already cast to output dtype).
    o_ref[0, 0:2, :] = coord_ref[...]
    o_ref[0, 2:, :] = x_ref[0, :, :]


def _choose_spatial_tile(hw, c, itemsize):
    """Largest multiple of 128 that divides hw and keeps the double-buffered
    per-step working set (input + coords + output) around ~4 MiB.
    Falls back to the full extent when hw is not a multiple of 128."""
    if hw % 128 != 0:
        return hw
    budget = 4 * 1024 * 1024
    per_elem = 2 * (2 * c + 4) * itemsize  # 2x for double buffering
    max_t = max(128, (budget // per_elem) // 128 * 128)
    tile = 128
    d = 256
    while d <= min(hw, max_t):
        if hw % d == 0:
            tile = d
        d += 128
    return tile


def position_embeding(features, is_pos_ebd=True):
    """JAX wrapper mirroring PositionEmbeding.forward (NCHW layout)."""
    if not is_pos_ebd:
        return features

    B, C, H, W = features.shape
    HW = H * W
    dtype = features.dtype

    # Coordinate channels computed once in the wrapper: float32 math, then a
    # cast to the feature dtype (matches `.to(x)` in the PyTorch module).
    # Division folded into compile-time reciprocals; degenerate H==1 / W==1
    # guarded to 0 instead of producing inf/nan.
    inv_h = 2.0 / (H - 1) if H > 1 else 0.0
    inv_w = 2.0 / (W - 1) if W > 1 else 0.0
    y = jnp.arange(H, dtype=jnp.float32) * inv_h - 1.0
    x = jnp.arange(W, dtype=jnp.float32) * inv_w - 1.0
    x_loc = jnp.broadcast_to(x[None, :], (H, W))
    y_loc = jnp.broadcast_to(y[:, None], (H, W))
    coords = jnp.stack([x_loc, y_loc], axis=0).reshape(2, HW).astype(dtype)

    feats_flat = features.reshape(B, C, HW)

    thw = _choose_spatial_tile(HW, C, jnp.dtype(dtype).itemsize)
    n_tiles = HW // thw

    out_flat = pl.pallas_call(
        _pos_embed_kernel,
        out_shape=jax.ShapeDtypeStruct((B, C + 2, HW), dtype),
        grid_spec=pltpu.PrefetchScalarGridSpec(
            num_scalar_prefetch=0,
            grid=(B, n_tiles),
            in_specs=[
                pl.BlockSpec((2, thw), lambda b, t: (0, t)),
                pl.BlockSpec((1, C, thw), lambda b, t: (b, 0, t)),
            ],
            out_specs=pl.BlockSpec((1, C + 2, thw), lambda b, t: (b, 0, t)),
        ),
        compiler_params=pltpu.CompilerParams(
            dimension_semantics=("parallel", "parallel"),
            vmem_limit_bytes=32 * 1024 * 1024,
        ),
    )(coords, feats_flat)

    return out_flat.reshape(B, C + 2, H, W)


def _reference(features):
    """Pure-JAX reference matching the PyTorch forward."""
    B, C, H, W = features.shape
    y = -1.0 + 2.0 * jnp.arange(H, dtype=jnp.float32) / (H - 1)
    x = -1.0 + 2.0 * jnp.arange(W, dtype=jnp.float32) / (W - 1)
    y_loc, x_loc = jnp.meshgrid(y, x, indexing="ij")
    coords = jnp.stack([x_loc, y_loc], axis=0).astype(features.dtype)
    coords = jnp.broadcast_to(coords[None], (B, 2, H, W))
    return jnp.concatenate([coords, features], axis=1)


if __name__ == "__main__":
    key = jax.random.PRNGKey(0)
    B, C, H, W = 2, 4, 16, 16
    features = jax.random.normal(key, (B, C, H, W), dtype=jnp.float32)

    out = position_embeding(features, is_pos_ebd=True)
    out = jax.block_until_ready(out)

    ref = _reference(features)
    assert out.shape == (B, C + 2, H, W), out.shape
    assert jnp.allclose(out, ref, atol=1e-6, rtol=1e-6), "mismatch vs reference"

    print("KERNEL_OK")
</pallas_src>

<mosaic_0001>
module attributes {stable_mosaic.version = 11 : i64} {
  func.func @_pos_embed_kernel(%arg0: i32, %arg1: i32, %arg2: memref<2x256xf32, #tpu.memory_space<vmem>>, %arg3: memref<1x4x256xf32, #tpu.memory_space<vmem>>, %arg4: memref<1x6x256xf32, #tpu.memory_space<vmem>>) attributes {dimension_semantics = [#tpu.dimension_semantics<parallel>, #tpu.dimension_semantics<parallel>], iteration_bounds = array<i64: 2, 1>, scalar_prefetch = 0 : i64, scratch_operands = 0 : i64, tpu.core_type = #tpu.core_type<tc>, window_params = [{transform_indices = @transform_0, window_bounds = array<i64: 2, 256>}, {transform_indices = @transform_1, window_bounds = array<i64: 1, 4, 256>}, {transform_indices = @transform_2, window_bounds = array<i64: 1, 6, 256>}]} {
    %c0 = arith.constant 0 : index
    %c0_0 = arith.constant 0 : index
    %0 = vector.load %arg2[%c0, %c0_0] : memref<2x256xf32, #tpu.memory_space<vmem>>, vector<2x256xf32>
    %c0_1 = arith.constant 0 : index
    %c0_2 = arith.constant 0 : index
    %c0_3 = arith.constant 0 : index
    %1 = vector.load %arg4[%c0_1, %c0_2, %c0_3] : memref<1x6x256xf32, #tpu.memory_space<vmem>>, vector<1x2x256xf32>
    %2 = vector.shape_cast %1 : vector<1x2x256xf32> to vector<2x256xf32>
    %3 = vector.shape_cast %0 : vector<2x256xf32> to vector<1x2x256xf32>
    tpu.vector_store %arg4[%c0_1, %c0_2, %c0_3], %3 {strides = array<i32>} : memref<1x6x256xf32, #tpu.memory_space<vmem>>, vector<1x2x256xf32>,
    %c0_4 = arith.constant 0 : index
    %c0_5 = arith.constant 0 : index
    %c0_6 = arith.constant 0 : index
    %4 = vector.load %arg3[%c0_4, %c0_5, %c0_6] : memref<1x4x256xf32, #tpu.memory_space<vmem>>, vector<1x4x256xf32>
    %5 = vector.shape_cast %4 : vector<1x4x256xf32> to vector<4x256xf32>
    %c0_7 = arith.constant 0 : index
    %c2 = arith.constant 2 : index
    %c0_8 = arith.constant 0 : index
    %6 = vector.load %arg4[%c0_7, %c2, %c0_8] : memref<1x6x256xf32, #tpu.memory_space<vmem>>, vector<1x4x256xf32>
    %7 = vector.shape_cast %6 : vector<1x4x256xf32> to vector<4x256xf32>
    %8 = vector.shape_cast %5 : vector<4x256xf32> to vector<1x4x256xf32>
    tpu.vector_store %arg4[%c0_7, %c2, %c0_8], %8 {strides = array<i32>} : memref<1x6x256xf32, #tpu.memory_space<vmem>>, vector<1x4x256xf32>,
    return
  }
  func.func @transform_0(%arg0: i32, %arg1: i32) -> (i32, i32) {
    %c0_i32 = arith.constant 0 : i32
    %c0_i32_0 = arith.constant 0 : i32
    return %c0_i32, %arg1 : i32, i32
  }
  func.func @transform_1(%arg0: i32, %arg1: i32) -> (i32, i32, i32) {
    %c0_i32 = arith.constant 0 : i32
    %c0_i32_0 = arith.constant 0 : i32
    return %arg0, %c0_i32, %arg1 : i32, i32, i32
  }
  func.func @transform_2(%arg0: i32, %arg1: i32) -> (i32, i32, i32) {
    %c0_i32 = arith.constant 0 : i32
    %c0_i32_0 = arith.constant 0 : i32
    return %arg0, %c0_i32, %arg1 : i32, i32, i32
  }
}

</mosaic_0001>

<bundles_post_ra>
// kernel: tpu_custom_call.1
= control target key start
LH: loop header
LB: loop body
LE: loop exit
PB: predicated region body
PF: predicated region fallthrough
CT: control target
= control target key end

     0   :  { %7 = vsyncpa [#allocation3], 0  ;;  %s723_s0 = inlined_call_operand.hbm [shape: f32[2,256], index: 0, kind: input, shape index: {}]   ;;  %s724_s1 = inlined_call_operand.hbm [shape: f32[2,4,256], index: 1, kind: input, shape index: {}]   ;;  %s725_s2 = inlined_call_operand.vmem [shape: f32[2,6,256], index: 2, kind: output, shape index: {}]  }
   0x1   :  { %8 = vsyncpa [#allocation5], 0 }
   0x2   :  { %10 = vsyncpa [#allocation5 + $0x1], 0  ;;  %s560_s9 = smov 0   ;;  %s562_s10 = smov 0  }
   0x3   :  { %s564_s11 = smov 0   ;;  %s566_s12 = smov 0  }
   0x4   :  { %s568_s13 = smov 0   ;;  %s570_s14 = smov 0  }
   0x5 LB: > { %s344_s15 = sadd.s32 4294967295, %s541_s14   ;;  %p76_p0 = scmp.ne.s32.totalorder %s525_s10, %s521_s9  ;;  %s541_s14 = sphi %s570_s14, %s16_s14   ;;  %s537_s13 = sphi %s568_s13, %s744_s13   ;;  %s533_s12 = sphi %s566_s12, %s743_s12   ;;  %s529_s11 = sphi %s564_s11, %s742_s11   ;;  %s525_s10 = sphi %s562_s10, %s741_s10   ;;  %s521_s9 = sphi %s560_s9, %s740_s9  }
   0x6   : > { %p590_p1 = scmp.eq.s32.totalorder %s344_s15, 0  ;;  %p346_p2 = scmp.ge.s32.totalorder %s541_s14, 1 }
   0x7   : > { %p115_p3 = scmp.lt.s32.totalorder %s541_s14, 3  ;;  %s543_s19 = smov [#allocation2]  }
   0x8   : > { %s730_s16 = scalar_select %p590_p1, 1, 0 }
   0x9   : > { %p598_p4 = por %p590_p1, %p76_p0  ;;  %p602_p5 = pnand %p346_p2, %p115_p3 }
   0xa   : > { %s131_s20 = sshll.u32 %s543_s19, 4  ;;  %s28_s22 = sadd.s32 1, %s537_s13  ;;  %s132_s20 = int_to_ptr.vmem [resolvable:$true] %s131_s20 }
   0xb   : > { %s731_s17 = scalar_select %p598_p4, 1, 0 }
   0xc   : > { %s732_s18 = scalar_select %p602_p5, 1, 0 }
   0xd   : > { %p368_p6 = pneg %p602_p5  ;;  %s63_s23 = sadd.s32 1, %s529_s11 }
   0xe   : > { %p616_p8 = scmp.ge.s32.totalorder %s28_s22, 2  ;;  %s429_s27 = scalar_lea.hbm %s723_s0, 64 }
   0xf   : > { %p610_p7 = pnand %p368_p6, %p590_p1  ;;  %p430_p9 = scmp.ne.s32.totalorder %s723_s0, %s429_s27 }
  0x10   : > { %s734_s24 = scalar_select %p616_p8, 1, 0 }
  0x11   : > { %p431_p10 = pneg %p610_p7  ;;  %p436_p13 = scmp.lt.u32.totalorder %s429_s27, %s723_s0 }
  0x13   : > { %p432_p11 = pnand %p431_p10, %p430_p9 }
  0x15   : > { %p433_p12 = pneg %p432_p11 }
  0x17   : > { %p438_p0 = pnand %p436_p13, %p433_p12 }
  0x19   : > { %441 = shalt.err (!%p438_p0)
}
  0x1a   : > { %s442_s4 = scalar_lea.vmem %s132_s20, 64  ;;  %p450_p4 = scmp.lt.s32.totalorder %s132_s20, %s132_s20 }
  0x1b   : > { %p443_p2 = scmp.ne.s32.totalorder %s132_s20, %s442_s4  ;;  %p451_p1 = scmp.lt.s32.totalorder %s442_s4, %s442_s4 }
  0x1d   : > { %p445_p3 = pnand %p443_p2, %p431_p10  ;;  %p452_p5 = por %p451_p1, %p450_p4 }
  0x1f   : > { %p446_p6 = pneg %p445_p3 }
  0x21   : > { %p453_p8 = pnand %p452_p5, %p446_p6 }
  0x23   : > { %456 = shalt.err (!%p453_p8)
}
  0x24   : > { %371 = dma.hbm_to_vmem [thread:$0]  (!%p610_p7), %s723_s0, 64, %s132_s20, [#allocation3]  }
  0x25   : > { %p735_p9 = scmp.ne.s32.totalorder %s734_s24, 0  ;;  %p70_p1 = scmp.ne.s32.totalorder %s529_s11, %s525_s10 }
  0x26   : > { %p71_p4 = scmp.eq.s32.totalorder %s541_s14, 0  ;;  %p377_p5 = scmp.lt.s32.totalorder %s541_s14, 2 }
  0x27   : > { %s746_s22 = smov (%p735_p9, %s28_s22), 0  ;;  %s142_s8 = sand.u32 1, %s529_s11  }
  0x28   : > { %s58_s7 = ssub.s32 %s537_s13, %s746_s22  ;;  %p72_p10 = por %p71_p4, %p70_p1 }
  0x29   : > { %p61_p8 = scmp.eq.s32.totalorder %s58_s7, 0  ;;  %s360_s9 = sshll.u32 %s537_s13, 7 }
  0x2a   : > { %s349_s19 = sshll.u32 %s142_s8, 3  ;;  %s656_s20 = scalar_lea.hbm %s724_s1, %s360_s9 }
  0x2b   : > { %s651_s15 = scalar_select %p61_p8, %s529_s11, %s63_s23  }
  0x2c   : > { %s146_s24 = scalar_lea.vmem [#allocation4], %s349_s19  ;;  %p658_p7 = pnand %p377_p5, %p72_p10 }
  0x2d   : > { %s156_s26 = sshll.u32 %s146_s24, 4  ;;  %s143_s23 = scalar_lea.sflag [#allocation5], %s142_s8  ;;  %s662_s26 = int_to_ptr.vmem [resolvable:$true] %s156_s26 }
  0x2e   : > { %s457_s28 = scalar_lea.hbm %s656_s20, 128  ;;  %p459_p12 = pneg %p658_p7 }
  0x2f   : > { %p458_p11 = scmp.ne.s32.totalorder %s656_s20, %s457_s28  ;;  %s462_s3 = scalar_lea.hbm %s724_s1, 256 }
  0x30   : > { %p463_p2 = scmp.lt.u32.totalorder %s656_s20, %s724_s1  ;;  %p464_p3 = scmp.lt.u32.totalorder %s462_s3, %s457_s28 }
  0x31   : > { %p460_p13 = pnand %p459_p12, %p458_p11  ;;  %p466_p9 = scmp.lt.u32.totalorder %s457_s28, %s656_s20 }
  0x32   : > { %p465_p6 = por %p464_p3, %p463_p2 }
  0x33   : > { %p461_p0 = pneg %p460_p13 }
  0x34   : > { %p467_p1 = por %p466_p9, %p465_p6 }
  0x36   : > { %p468_p4 = pnand %p467_p1, %p461_p0 }
  0x38   : > { %471 = shalt.err (!%p468_p4)
}
  0x39   : > { %s472_s6 = scalar_lea.vmem %s662_s26, 128  ;;  %s544_s7 = smov [#allocation4]  }
  0x3a   : > { %p473_p5 = scmp.ne.s32.totalorder %s662_s26, %s472_s6  ;;  %s477_s8 = sshll.u32 %s544_s7, 4  ;;  %s478_s8 = int_to_ptr.vmem [resolvable:$false] %s477_s8 }
  0x3b   : > { %s479_s9 = scalar_lea.vmem %s478_s8, 256  ;;  %p480_p11 = scmp.lt.s32.totalorder %s662_s26, %s478_s8 }
  0x3c   : > { %p475_p8 = pnand %p473_p5, %p459_p12  ;;  %p481_p13 = scmp.lt.s32.totalorder %s479_s9, %s472_s6 }
  0x3e   : > { %p476_p10 = pneg %p475_p8  ;;  %p482_p2 = por %p481_p13, %p480_p11 }
  0x40   : > { %p483_p3 = pnand %p482_p2, %p476_p10 }
  0x42   : > { %486 = shalt.err (!%p483_p3)
}
  0x43   : > { %375 = dma.hbm_to_vmem [thread:$0]  (!%p658_p7), %s656_s20, 128, %s662_s26, %s143_s23  }
  0x44   : > { %p737_p0 = scmp.ne.s32.totalorder %s732_s18, 0 }
  0x45   : > { %p738_p12 = scmp.ne.s32.totalorder (!%p737_p0), %s730_s16, 0 }
  0x46   : > { %165 = sbr.rel (%p737_p0) target bundleno = 89 (0x59), region = 28 }
  0x4d   : > { %512 = dma.done.wait (%p738_p12), [#allocation3], 64  }
  0x4e   : > { %514 = vsyncadd (%p738_p12), [#allocation3], 4294967232  ;;  %s171_s19 = sand.u32 1, %s525_s10   ;;  %p739_p6 = scmp.ne.s32.totalorder %s731_s17, 0 }
  0x4f   : > { %s354_s21 = sshll.u32 %s171_s19, 3  ;;  %s172_s25 = scalar_lea.sflag [#allocation5], %s171_s19 }
  0x50   : > { %s175_s24 = scalar_lea.vmem [#allocation4], %s354_s21 }
  0x51   : > { %516 = dma.done.wait (%p739_p6), %s172_s25, 128  }
  0x52   : > { %518 = vsyncadd (%p739_p6), %s172_s25, 4294967168  ;;  %p203_p7 = scmp.lt.s32.totalorder %s533_s12, 1  ;;  %v357_v0 = vld.sshfl [vmem:[#allocation2] sm:$0x33 pattern:$0x76325410] }
  0x53   : > { %v226_v1 = vld [vmem:[%s175_s24] sm:$0xff]  ;;  %v221_v2 = vcombine.high %v357_v0, %v357_v0 }
  0x54   : > { %s748_s12 = smov (!%p203_p7, %s533_s12), 1  ;;  %v229_v3 = vrot.slane %v226_v1, 6  ;;  %v228_v4 = vcombine.high %v226_v1, %v226_v1 }
  0x55   : > { %s361_s18 = sshll.u32 %s748_s12, 4 }
  0x56   : > { %s210_s16 = scalar_lea.vmem %s725_s2, %s361_s18  ;;  %v230_v5 = vrot.slane %v228_v4, 6 }
  0x57   : > { %224 = vst [vmem:[%s210_s16] sm:$0x3] %v357_v0  ;;  %225 = vst [vmem:[%s210_s16 + $0x8] sm:$0x3] %v221_v2 }
  0x58   : > { %233 = vst [vmem:[%s210_s16] sm:$0x3c] %v229_v3  ;;  %234 = vst [vmem:[%s210_s16 + $0x8] sm:$0x3c] %v230_v5 }
  0x59 PF: > { %s16_s14 = sadd.s32 1, %s541_s14   ;;  %s740_s9 = smov %s525_s10 }
  0x5a   : > { %p13_p9 = scmp.ge.s32.totalorder %s16_s14, 4   ;;  %s741_s10 = smov %s529_s11 }
  0x5b   : > { %s742_s11 = smov %s651_s15  ;;  %s743_s12 = smov %s537_s13 }
  0x5c   : > { %s744_s13 = smov %s746_s22  ;;  %15 = sbr.rel (!%p13_p9) target bundleno = 5 (0x5), region = 74 }
  0x63   :  { %265 = vsyncpa [#allocation3], 1 }
  0x64   :  { %267 = vsyncpa [#allocation3 + $0x1], 1 }
  0x65   :  { %268 = vsyncpa [#allocation5], 1 }
  0x66   :  { %270 = vsyncpa [#allocation5 + $0x1], 1 }

</bundles_post_ra>
